<compile_context>
chip_gen: v6e
topology: v6e:2x2x1
jax: 0.10.0
libtpu: 0.0.40
codegen_flags: <defaults>
</compile_context>

<pallas_src>
import functools

import jax
import jax.numpy as jnp
from jax import lax
from jax.experimental import pallas as pl
from jax.experimental.pallas import tpu as pltpu


def instance_net_kernel(drug_ref, dis_ref, attn_ref, wT_ref, out_ref, *, k: int):
    """drug_ref/dis_ref: (Bb, N, D); attn_ref: (Bb, N); wT_ref: (D, D) = W^T; out_ref: (Bb, 1)."""
    Bb, N, D = drug_ref.shape

    # Leading-dim merge of lane-aligned tiles (N sits on sublanes; free when N % 8 == 0).
    drug = drug_ref[...].reshape(Bb * N, D)
    # astype is a no-op for f32 inputs; it is the bf16 -> f32 upcast on the bf16 fast path
    # (keep the elementwise multiply + D-reduction in f32 — v5e has no bf16 VPU).
    dis = dis_ref[...].reshape(Bb * N, D).astype(jnp.float32)

    # Single fused MXU matmul for every (batch, instance) row: drug @ W^T.
    # wT is pre-transposed in the wrapper, so no per-call weight transpose/relayout.
    y = lax.dot_general(
        drug, wT_ref[...],
        dimension_numbers=(((1,), (0,)), ((), ())),
        preferred_element_type=jnp.float32)                       # (Bb*N, D) f32

    # Bilinear score per instance, then attention scaling, laid out (Bb, N): N on the lane axis.
    pred = jnp.sum((y * dis).reshape(Bb, N, D), axis=-1)          # (Bb, N)
    scores = attn_ref[...] * pred                                 # (Bb, N) f32

    # Batched top-k: k rounds of max-extraction on all rows at once (lane reductions).
    # Only iota is materialized; -inf and the out-of-bounds index N stay scalars.
    iota = lax.broadcasted_iota(jnp.int32, (Bb, N), 1)
    vals = scores
    total = jnp.zeros((Bb, 1), jnp.float32)
    for _ in range(k):                                            # k is static & small -> unrolled
        m = jnp.max(vals, axis=-1, keepdims=True)                 # (Bb, 1)
        # first occurrence of the per-row max (tie handling like topk)
        idx = jnp.min(jnp.where(vals == m, iota, N), axis=-1, keepdims=True)
        total = total + m
        vals = jnp.where(iota == idx, -jnp.inf, vals)

    # TODO(synk): if B grows, accumulate into a lane-dense (1, Bb) slab (or SMEM) instead of this
    # (Bb, 1) column (masked vst) and reshape in the wrapper; output bytes are tiny so minor.
    out_ref[...] = total * (1.0 / k)


def instance_net_forward(ins_emb, attn, weight, k, *, block_b=None,
                         compute_dtype=jnp.float32):
    """Pallas implementation of InstanceNet.forward.

    ins_emb: (B, N, F) f32, attn: (B, N, 1) f32,
    weight: (D, D) f32 (PyTorch nn.Linear weight, applied as x @ W^T), D = F // 2.
    Returns: (B, 1) f32.
    """
    B, N, F = ins_emb.shape
    assert F % 2 == 0, "in_feats must be even"
    D = F // 2
    assert k <= N, "k must not exceed the number of instances"

    if block_b is None:
        block_b = B          # demo size: whole problem in one grid step
    assert B % block_b == 0
    # Production sizing: pick block_b (== B or a multiple of 8) so block_b*N >= ~512 rows, and
    # budget the double-buffered drug+dis+attn tiles plus the f32 y temporary against the scoped
    # VMEM limit: 16 MiB default on v5e, 32 MiB on v6e/v7x (64 MiB physical on v7x); raise via
    # pltpu.CompilerParams(vmem_limit_bytes=...) if needed.

    # --- wrapper-side layout plumbing (one-time / free) ---
    # drug|dis split at the DMA boundary: (B, N, 2, D) reshape is free, one transpose to
    # (B, 2, N, D) so each half arrives as its own lane-aligned (block_b, N, D) tile.
    emb = jnp.transpose(ins_emb.reshape(B, N, 2, D), (0, 2, 1, 3))
    if compute_dtype != emb.dtype:
        emb = emb.astype(compute_dtype)       # bf16 halves HBM input bytes (mem-bound kernel)
    # squeeze attn (B, N, 1) -> (B, N): N lands on the lane axis, no in-kernel relayout.
    attn2d = attn.reshape(B, N).astype(jnp.float32)
    # pre-transpose the static weight once so the MXU sees a non-transposed contraction.
    wT = weight.T.astype(compute_dtype)

    kernel = functools.partial(instance_net_kernel, k=k)
    return pl.pallas_call(
        kernel,
        out_shape=jax.ShapeDtypeStruct((B, 1), jnp.float32),
        grid=(B // block_b,),
        in_specs=[
            # drug half: dim-1 block index 0 (size-1 dim squeezed from the kernel Ref)
            pl.BlockSpec((block_b, None, N, D), lambda i: (i, 0, 0, 0)),
            # dis half: dim-1 block index 1
            pl.BlockSpec((block_b, None, N, D), lambda i: (i, 1, 0, 0)),
            # attention, (block_b, N) with N on lanes
            pl.BlockSpec((block_b, N), lambda i: (i, 0)),
            # W^T, resident across the whole grid
            pl.BlockSpec((D, D), lambda i: (0, 0)),
        ],
        out_specs=pl.BlockSpec((block_b, 1), lambda i: (i, 0)),
        compiler_params=pltpu.CompilerParams(
            dimension_semantics=("parallel",)),
    )(emb, emb, attn2d, wT)


def _reference(ins_emb, attn, weight, k):
    """Pure-JAX reference mirroring the PyTorch forward."""
    D = ins_emb.shape[-1] // 2
    drug = ins_emb[:, :, :D]
    dis = ins_emb[:, :, D:]
    y = jnp.einsum("bnd,ed->bne", drug, weight)        # Linear(drug), no bias (x @ W^T)
    pred = jnp.sum(y * dis, axis=-1, keepdims=True)    # (B, N, 1)
    attn_pred = attn * pred                            # (B, N, 1)
    topv = lax.top_k(attn_pred[..., 0], k)[0]          # (B, k)
    return jnp.mean(topv, axis=1, keepdims=True)       # (B, 1)


if __name__ == "__main__":
    B, N, F, K = 2, 8, 32, 3
    D = F // 2

    key = jax.random.PRNGKey(0)
    k_emb, k_attn, k_w = jax.random.split(key, 3)

    ins_emb = jax.random.normal(k_emb, (B, N, F), dtype=jnp.float32)
    attn = jax.random.uniform(k_attn, (B, N, 1), dtype=jnp.float32)

    # Xavier-uniform init for the (D, D) Linear weight (deterministic).
    bound = (6.0 / (D + D)) ** 0.5
    weight = jax.random.uniform(k_w, (D, D), dtype=jnp.float32, minval=-bound, maxval=bound)

    ref = _reference(ins_emb, attn, weight, K)

    # f32 path: must match the PyTorch/JAX reference tightly.
    out = jax.block_until_ready(instance_net_forward(ins_emb, attn, weight, K))
    assert out.shape == (B, 1)
    assert jnp.allclose(out, ref, atol=1e-5, rtol=1e-5), (out, ref)

    # bf16 fast path (for mem-bound production sizes): same kernel, half the HBM input bytes.
    out_bf16 = jax.block_until_ready(
        instance_net_forward(ins_emb, attn, weight, K, compute_dtype=jnp.bfloat16))
    assert out_bf16.shape == (B, 1)
    assert jnp.allclose(out_bf16, ref, atol=1e-1, rtol=1e-1), (out_bf16, ref)

    print("KERNEL_OK")
</pallas_src>

<mosaic_0001>
module attributes {stable_mosaic.version = 11 : i64} {
  func.func @instance_net_kernel(%arg0: i32, %arg1: memref<2x1x8x16xf32, #tpu.memory_space<vmem>>, %arg2: memref<2x1x8x16xf32, #tpu.memory_space<vmem>>, %arg3: memref<2x8xf32, #tpu.memory_space<vmem>>, %arg4: memref<16x16xf32, #tpu.memory_space<vmem>>, %arg5: memref<2x1xf32, #tpu.memory_space<vmem>>) attributes {dimension_semantics = [#tpu.dimension_semantics<parallel>], iteration_bounds = array<i64: 1>, scalar_prefetch = 0 : i64, scratch_operands = 0 : i64, tpu.core_type = #tpu.core_type<tc>, window_params = [{transform_indices = @transform_0, window_bounds = array<i64: 2, 1, 8, 16>}, {transform_indices = @transform_1, window_bounds = array<i64: 2, 1, 8, 16>}, {transform_indices = @transform_2, window_bounds = array<i64: 2, 8>}, {pipeline_mode = #tpu.pipeline_mode<synchronous>, transform_indices = @transform_3, window_bounds = array<i64: 16, 16>}, {transform_indices = @transform_4, window_bounds = array<i64: 2, 1>}]} {
    %c0 = arith.constant 0 : index
    %c0_0 = arith.constant 0 : index
    %c0_1 = arith.constant 0 : index
    %c0_2 = arith.constant 0 : index
    %0 = vector.load %arg1[%c0, %c0_0, %c0_1, %c0_2] : memref<2x1x8x16xf32, #tpu.memory_space<vmem>>, vector<2x1x8x16xf32>
    %1 = vector.shape_cast %0 : vector<2x1x8x16xf32> to vector<2x8x16xf32>
    %2 = vector.shape_cast %1 : vector<2x8x16xf32> to vector<16x16xf32>
    %c0_3 = arith.constant 0 : index
    %c0_4 = arith.constant 0 : index
    %c0_5 = arith.constant 0 : index
    %c0_6 = arith.constant 0 : index
    %3 = vector.load %arg2[%c0_3, %c0_4, %c0_5, %c0_6] : memref<2x1x8x16xf32, #tpu.memory_space<vmem>>, vector<2x1x8x16xf32>
    %4 = vector.shape_cast %3 : vector<2x1x8x16xf32> to vector<2x8x16xf32>
    %5 = vector.shape_cast %4 : vector<2x8x16xf32> to vector<16x16xf32>
    %c0_7 = arith.constant 0 : index
    %c0_8 = arith.constant 0 : index
    %6 = vector.load %arg4[%c0_7, %c0_8] : memref<16x16xf32, #tpu.memory_space<vmem>>, vector<16x16xf32>
    %cst = arith.constant dense<0.000000e+00> : vector<16x16xf32>
    %7 = tpu.matmul %2, %6, %cst {dimension_numbers = #tpu.dot_dimension_numbers<[1], [0], [0], [1], [0, 0, 1, 1], [], []>} : vector<16x16xf32>, vector<16x16xf32>, vector<16x16xf32> -> vector<16x16xf32>
    %8 = arith.mulf %7, %5 : vector<16x16xf32>
    %9 = vector.shape_cast %8 : vector<16x16xf32> to vector<2x8x16xf32>
    %cst_9 = arith.constant dense<0.000000e+00> : vector<2x8xf32>
    %10 = vector.multi_reduction <add>, %9, %cst_9 [2] : vector<2x8x16xf32> to vector<2x8xf32>
    %c0_10 = arith.constant 0 : index
    %c0_11 = arith.constant 0 : index
    %11 = vector.load %arg3[%c0_10, %c0_11] : memref<2x8xf32, #tpu.memory_space<vmem>>, vector<2x8xf32>
    %12 = arith.mulf %11, %10 : vector<2x8xf32>
    %13 = tpu.iota {dimensions = array<i32: 1>} : vector<2x8xi32>
    %cst_12 = arith.constant 0.000000e+00 : f32
    %14 = vector.broadcast %cst_12 : f32 to vector<2x1xf32>
    %cst_13 = arith.constant dense<0xFF800000> : vector<2xf32>
    %15 = vector.multi_reduction <maximumf>, %12, %cst_13 [1] : vector<2x8xf32> to vector<2xf32>
    %16 = vector.shape_cast %15 : vector<2xf32> to vector<2x1xf32>
    %17 = vector.broadcast %16 : vector<2x1xf32> to vector<2x8xf32>
    %18 = arith.cmpf oeq, %12, %17 : vector<2x8xf32>
    %c8_i32 = arith.constant 8 : i32
    %19 = vector.broadcast %c8_i32 : i32 to vector<2x8xi32>
    %20 = arith.select %18, %13, %19 : vector<2x8xi1>, vector<2x8xi32>
    %cst_14 = arith.constant dense<2147483647> : vector<2xi32>
    %21 = vector.multi_reduction <minsi>, %20, %cst_14 [1] : vector<2x8xi32> to vector<2xi32>
    %22 = vector.shape_cast %21 : vector<2xi32> to vector<2x1xi32>
    %23 = arith.addf %14, %16 : vector<2x1xf32>
    %24 = vector.broadcast %22 : vector<2x1xi32> to vector<2x8xi32>
    %25 = arith.cmpi eq, %13, %24 : vector<2x8xi32>
    %cst_15 = arith.constant 0xFF800000 : f32
    %26 = vector.broadcast %cst_15 : f32 to vector<2x8xf32>
    %27 = arith.select %25, %26, %12 : vector<2x8xi1>, vector<2x8xf32>
    %cst_16 = arith.constant dense<0xFF800000> : vector<2xf32>
    %28 = vector.multi_reduction <maximumf>, %27, %cst_16 [1] : vector<2x8xf32> to vector<2xf32>
    %29 = vector.shape_cast %28 : vector<2xf32> to vector<2x1xf32>
    %30 = vector.broadcast %29 : vector<2x1xf32> to vector<2x8xf32>
    %31 = arith.cmpf oeq, %27, %30 : vector<2x8xf32>
    %c8_i32_17 = arith.constant 8 : i32
    %32 = vector.broadcast %c8_i32_17 : i32 to vector<2x8xi32>
    %33 = arith.select %31, %13, %32 : vector<2x8xi1>, vector<2x8xi32>
    %cst_18 = arith.constant dense<2147483647> : vector<2xi32>
    %34 = vector.multi_reduction <minsi>, %33, %cst_18 [1] : vector<2x8xi32> to vector<2xi32>
    %35 = vector.shape_cast %34 : vector<2xi32> to vector<2x1xi32>
    %36 = arith.addf %23, %29 : vector<2x1xf32>
    %37 = vector.broadcast %35 : vector<2x1xi32> to vector<2x8xi32>
    %38 = arith.cmpi eq, %13, %37 : vector<2x8xi32>
    %cst_19 = arith.constant 0xFF800000 : f32
    %39 = vector.broadcast %cst_19 : f32 to vector<2x8xf32>
    %40 = arith.select %38, %39, %27 : vector<2x8xi1>, vector<2x8xf32>
    %cst_20 = arith.constant dense<0xFF800000> : vector<2xf32>
    %41 = vector.multi_reduction <maximumf>, %40, %cst_20 [1] : vector<2x8xf32> to vector<2xf32>
    %42 = vector.shape_cast %41 : vector<2xf32> to vector<2x1xf32>
    %43 = arith.addf %36, %42 : vector<2x1xf32>
    %cst_21 = arith.constant 0.333333343 : f32
    %44 = vector.broadcast %cst_21 : f32 to vector<2x1xf32>
    %45 = arith.mulf %43, %44 : vector<2x1xf32>
    %c0_22 = arith.constant 0 : index
    %c0_23 = arith.constant 0 : index
    %46 = vector.load %arg5[%c0_22, %c0_23] : memref<2x1xf32, #tpu.memory_space<vmem>>, vector<2x1xf32>
    tpu.vector_store %arg5[%c0_22, %c0_23], %45 {strides = array<i32>} : memref<2x1xf32, #tpu.memory_space<vmem>>, vector<2x1xf32>,
    return
  }
  func.func @transform_0(%arg0: i32) -> (i32, i32, i32, i32) {
    %c0_i32 = arith.constant 0 : i32
    %c0_i32_0 = arith.constant 0 : i32
    %c0_i32_1 = arith.constant 0 : i32
    %c0_i32_2 = arith.constant 0 : i32
    return %arg0, %c0_i32, %c0_i32_0, %c0_i32_1 : i32, i32, i32, i32
  }
  func.func @transform_1(%arg0: i32) -> (i32, i32, i32, i32) {
    %c1_i32 = arith.constant 1 : i32
    %c0_i32 = arith.constant 0 : i32
    %c0_i32_0 = arith.constant 0 : i32
    %c0_i32_1 = arith.constant 0 : i32
    return %arg0, %c1_i32, %c0_i32, %c0_i32_0 : i32, i32, i32, i32
  }
  func.func @transform_2(%arg0: i32) -> (i32, i32) {
    %c0_i32 = arith.constant 0 : i32
    %c0_i32_0 = arith.constant 0 : i32
    return %arg0, %c0_i32 : i32, i32
  }
  func.func @transform_3(%arg0: i32) -> (i32, i32) {
    %c0_i32 = arith.constant 0 : i32
    %c0_i32_0 = arith.constant 0 : i32
    %c0_i32_1 = arith.constant 0 : i32
    return %c0_i32, %c0_i32_0 : i32, i32
  }
  func.func @transform_4(%arg0: i32) -> (i32, i32) {
    %c0_i32 = arith.constant 0 : i32
    %c0_i32_0 = arith.constant 0 : i32
    return %arg0, %c0_i32 : i32, i32
  }
}

</mosaic_0001>

<bundles_post_ra>
// kernel: tpu_custom_call.1
= control target key start
LH: loop header
LB: loop body
LE: loop exit
PB: predicated region body
PF: predicated region fallthrough
CT: control target
= control target key end

     0   :  { %9 = vsyncpa [#allocation3], 0  ;;  %s373_s0 = inlined_call_operand.hbm [shape: f32[2,2,8,16], index: 0, kind: input, shape index: {}]   ;;  %s374_s1 = inlined_call_operand.hbm [shape: f32[2,2,8,16], index: 1, kind: input, shape index: {}]   ;;  %s375_s2 = inlined_call_operand.vmem [shape: f32[2,8], index: 2, kind: input, shape index: {}]   ;;  %s376_s3 = inlined_call_operand.hbm [shape: f32[16,16], index: 3, kind: input, shape index: {}]   ;;  %s377_s4 = inlined_call_operand.vmem [shape: f32[2,1], index: 4, kind: output, shape index: {}]  }
   0x1   :  { %10 = vsyncpa [#allocation5], 0  ;;  %s28_s17 = scalar_lea.hbm %s374_s1, 128  ;;  %s318_s18 = smov [#allocation4]  }
   0x2   :  { %s29_s19 = sshll.u32 %s318_s18, 4  ;;  %s319_s20 = smov [#allocation2]   ;;  %s30_s19 = int_to_ptr.vmem [resolvable:$true] %s29_s19 }
   0x3   :  { %s16_s21 = sshll.u32 %s319_s20, 4  ;;  %s261_s22 = scalar_lea.vmem %s30_s19, 256  ;;  %s17_s21 = int_to_ptr.vmem [resolvable:$true] %s16_s21 }
   0x4   :  { %p262_p0 = scmp.ne.s32.totalorder %s30_s19, %s261_s22  ;;  %p266_p1 = scmp.lt.s32.totalorder %s30_s19, %s30_s19 }
   0x5   :  { %p267_p2 = scmp.lt.s32.totalorder %s261_s22, %s261_s22 }
   0x7   :  { %p268_p3 = por %p267_p2, %p266_p1 }
   0x9   :  { %p269_p4 = pnand %p268_p3, %p262_p0 }
   0xb   :  { %272 = shalt.err (!%p269_p4)
}
   0xc   :  { %s320_s23 = smov 256   ;;  %s321_s24 = smov 128  }
   0xd   :  { %s322_s25 = smov 8   ;;  %s282_s26 = scalar_lea.vmem %s17_s21, 256 }
   0xe   :  { %35 = dma.hbm_to_vmem [thread:$0]  %s28_s17, 256, %s30_s19, [#allocation5], %s320_s23, %s321_s24, %s322_s25  }
   0xf   :  { %p283_p5 = scmp.ne.s32.totalorder %s17_s21, %s282_s26  ;;  %p287_p6 = scmp.lt.s32.totalorder %s17_s21, %s17_s21 }
  0x10   :  { %p288_p7 = scmp.lt.s32.totalorder %s282_s26, %s282_s26 }
  0x12   :  { %p289_p8 = por %p288_p7, %p287_p6 }
  0x14   :  { %p290_p9 = pnand %p289_p8, %p283_p5 }
  0x16   :  { %293 = shalt.err (!%p290_p9)
}
  0x17   :  { %22 = dma.hbm_to_vmem [thread:$0]  %s373_s0, 256, %s17_s21, [#allocation3], %s320_s23, %s321_s24, %s322_s25  }
  0x18   :  { %s323_s28 = smov [#allocation6]  }
  0x19   :  { %s43_s29 = sshll.u32 %s323_s28, 4  ;;  %s44_s29 = int_to_ptr.vmem [resolvable:$true] %s43_s29 }
  0x1a   :  { %s302_s30 = scalar_lea.vmem %s44_s29, 256  ;;  %p307_p11 = scmp.lt.s32.totalorder %s44_s29, %s44_s29 }
  0x1b   :  { %p303_p10 = scmp.ne.s32.totalorder %s44_s29, %s302_s30  ;;  %p308_p12 = scmp.lt.s32.totalorder %s302_s30, %s302_s30 }
  0x1d   :  { %p309_p13 = por %p308_p12, %p307_p11 }
  0x1f   :  { %p310_p0 = pnand %p309_p13, %p303_p10 }
  0x21   :  { %313 = shalt.err (!%p310_p0)
}
  0x22   :  { %49 = dma.hbm_to_vmem [thread:$0]  %s376_s3, 256, %s44_s29, [#allocation5], %s321_s24, %s321_s24, %s322_s25  }
  0x23   :  { %314 = dma.done.wait [#allocation3], 256  }
  0x24   :  { %315 = vsyncadd [#allocation3], 4294967040 }
  0x25   :  { %316 = dma.done.wait [#allocation5], 512  }
  0x26   :  { %317 = vsyncadd [#allocation5], 4294966784  ;;  %vm65_vm0 = vcmask 130048   ;;  %v64_v0 = vld [vmem:[#allocation6 + $0x8] sm:$0xff]  ;;  %v63_v1 = vld [vmem:[#allocation6] sm:$0xff]  ;;  %v158_v12 = vlaneseq  ;;  %vm168_vm1 = vcmask 1041409  }
  0x27   :  { %v59_v2 = vld [vmem:[#allocation2] sm:$0xff]  ;;  %238 = vmatprep.subr.mxu0 %v64_v0  ;;  %v60_v3 = vld [vmem:[#allocation2 + $0x8] sm:$0xff]  ;;  %v61_v5 = vld [vmem:[#allocation4] sm:$0xff]  ;;  %vm172_vm2 = vcmask 58368   ;;  %vm224_vm9 = vcmask 1024  }
  0x28   :  { %242 = vmatprep.mubr.msk.f32.mxu0 %vm65_vm0, %v59_v2  ;;  %239 = vmatpush3.msra.mxu0 %v64_v0  ;;  %v62_v6 = vld [vmem:[#allocation4 + $0x8] sm:$0xff]  ;;  %v159_v13 = vand.u32 127, %v158_v12  ;;  %v161_v14 = vshrl.u32 %v158_v12, 7  ;;  %v155_v20 = vld [vmem:[%s375_s2] sm:$0x3] }
  0x29   :  { %240 = vmatprep.subr.mxu0 %v63_v1 }
  0x2a   :  { %241 = vmatpush3.msra.mxu0 %v63_v1  ;;  %v162_v16 = vsub.s32 %v159_v13, %v161_v14 }
  0x2b   :  { %243 = vmatmul.mubr.msk.f32.vlgmr.msra.gmra.mxu0 %vm65_vm0, %v60_v3 }
  0xeb   :  { %v244_v4 = vpop.f32.mrf.mxu0 }
  0xec   :  { %v148_v9 = vmul.f32 %v244_v4, %v62_v6 }
  0xed   :  { %v138_v7 = vpop.f32.mrf.mxu0 }
  0xee   :  { %v147_v8 = vmul.f32 %v138_v7, %v61_v5  ;;  %v152_v11 = vsel %vm65_vm0, %v148_v9, 0.0 }
  0xf0   :  { %v149_v10 = vsel %vm65_vm0, %v147_v8, 0.0 }
  0xf1   :  { %150 = vadd.xlane.f32.xlu0 %v149_v10 }
  0xf5   :  { %153 = vadd.xlane.f32.xlu0 %v152_v11 }
 0x17a   :  { %v151_v15 = vpop.xlane.xlu0 %150 }
 0x17b   :  { %v163_v18 = vrot.slane %v151_v15, %v162_v16 }
 0x17e   :  { %v154_v17 = vpop.xlane.xlu0 %153 }
 0x17f   :  { %v167_v19 = vrot.slane %v154_v17, %v162_v16 }
 0x181   :  { %v169_v21 = vsel %vm168_vm1, %v167_v19, %v163_v18 }
 0x182   :  { %v171_v22 = vmul.f32 %v169_v21, %v155_v20 }
 0x184   :  { %v173_v23 = vsel %vm172_vm2, %v171_v22, -inf }
 0x185   :  { %174 = vmax.xlane.f32.xlu1 %v173_v23 }
 0x20e   :  { %v175_v24 = vpop.xlane.xlu1 %174 }
 0x20f   :  { %vm176_vm3 = vcmp.eq.f32.partialorder %v171_v22, %v175_v24 }
 0x210   :  { %v177_v25 = vsel %vm176_vm3, %v159_v13, 8 }
 0x211   :  { %v178_v26 = vsel %vm172_vm2, %v177_v25, 2147483647 }
 0x212   :  { %v180_v27 = vshra.s32 %v178_v26, 16  ;;  %v179_v29 = vand.u32 65535, %v178_v26 }
 0x214   :  { %v182_v28 = vcvt.s32.f32 %v180_v27  ;;  %v181_v31 = vcvt.s32.f32 %v179_v29 }
 0x216   :  { %183 = vmin.xlane.f32.xlu1 %v182_v28 }
 0x29f   :  { %v184_v30 = vpop.xlane.xlu1 %183 }
 0x2a0   :  { %vm185_vm4 = vcmp.eq.f32.partialorder %v182_v28, %v184_v30  ;;  %v190_v33 = vcvt.f32.s32 %v184_v30 }
 0x2a1   :  { %v186_v32 = vsel %vm185_vm4, %v181_v31, inf }
 0x2a2   :  { %187 = vmin.xlane.f32.xlu0 %v186_v32  ;;  %v191_v35 = vshll.u32 %v190_v33, 16 }
 0x32b   :  { %v188_v34 = vpop.xlane.xlu0 %187 }
 0x32c   :  { %v189_v36 = vcvt.f32.s32 %v188_v34 }
 0x32e   :  { %v192_v37 = vadd.s32 %v191_v35, %v189_v36 }
 0x330   :  { %vm194_vm5 = vcmp.eq.s32.totalorder %v159_v13, %v192_v37 }
 0x331   :  { %v195_v38 = vsel %vm194_vm5, -inf, %v171_v22 }
 0x332   :  { %v196_v39 = vsel %vm172_vm2, %v195_v38, -inf }
 0x333   :  { %197 = vmax.xlane.f32.xlu1 %v196_v39 }
 0x3bc   :  { %v198_v40 = vpop.xlane.xlu1 %197 }
 0x3bd   :  { %vm199_vm6 = vcmp.eq.f32.partialorder %v195_v38, %v198_v40  ;;  %v216_v56 = vadd.f32 %v198_v40, %v175_v24 }
 0x3be   :  { %v200_v41 = vsel %vm199_vm6, %v159_v13, 8 }
 0x3bf   :  { %v201_v42 = vsel %vm172_vm2, %v200_v41, 2147483647 }
 0x3c0   :  { %v203_v43 = vshra.s32 %v201_v42, 16  ;;  %v202_v45 = vand.u32 65535, %v201_v42 }
 0x3c2   :  { %v205_v44 = vcvt.s32.f32 %v203_v43  ;;  %v204_v47 = vcvt.s32.f32 %v202_v45 }
 0x3c4   :  { %206 = vmin.xlane.f32.xlu0 %v205_v44 }
 0x44d   :  { %v207_v46 = vpop.xlane.xlu0 %206 }
 0x44e   :  { %vm208_vm7 = vcmp.eq.f32.partialorder %v205_v44, %v207_v46  ;;  %v213_v49 = vcvt.f32.s32 %v207_v46 }
 0x44f   :  { %v209_v48 = vsel %vm208_vm7, %v204_v47, inf }
 0x450   :  { %210 = vmin.xlane.f32.xlu1 %v209_v48  ;;  %v214_v51 = vshll.u32 %v213_v49, 16 }
 0x4d9   :  { %v211_v50 = vpop.xlane.xlu1 %210 }
 0x4da   :  { %v212_v52 = vcvt.f32.s32 %v211_v50 }
 0x4dc   :  { %v215_v53 = vadd.s32 %v214_v51, %v212_v52 }
 0x4de   :  { %vm217_vm8 = vcmp.eq.s32.totalorder %v159_v13, %v215_v53 }
 0x4df   :  { %v218_v54 = vsel %vm217_vm8, -inf, %v195_v38 }
 0x4e0   :  { %v219_v55 = vsel %vm172_vm2, %v218_v54, -inf }
 0x4e1   :  { %220 = vmax.xlane.f32.xlu0 %v219_v55 }
 0x56a   :  { %v221_v57 = vpop.xlane.xlu0 %220 }
 0x56b   :  { %v222_v58 = vadd.f32 %v221_v57, %v216_v56 }
 0x56d   :  { %v223_v59 = vmul.f32 0.33333334, %v222_v58 }
 0x56f   :  { %225 = vst.msk [vmem:[%s377_s4] sm:$0x3] %vm224_vm9, %v223_v59 }
 0x570   :  { %230 = vsyncpa [#allocation3], 1 }
 0x571   :  { %231 = vsyncpa [#allocation5], 1 }

</bundles_post_ra>
